<compile_context>
chip_gen: v7x
topology: tpu7x:2x2x1
jax: 0.10.0
libtpu: 0.0.40
codegen_flags: <defaults>
</compile_context>

<pallas_src>
from functools import partial

import numpy as np
import jax
import jax.numpy as jnp
from jax.experimental import pallas as pl
from jax.experimental.pallas import tpu as pltpu


# ----------------------------- Pallas kernel ------------------------------ #

def _vq_levels_kernel(x_ref, cb_ref, hc2_ref, q_ref, sse_ref):
    """Fused multi-level vector quantization over one lane-dense tile.

    x_ref:   (1, d, t)        one batch row, a t-wide slice of H*W on lanes
    cb_ref:  (L, Kmax, d)     stacked, zero-padded codebooks
    hc2_ref: (L, Kmax, 1)     0.5*||c_k||^2 (padded rows hold a 1e30 sentinel)
    q_ref:   (L, 1, d, t)     quantized outputs (lane-dense, input dtype)
    sse_ref: (1, 1, L, 128)   per-grid-step partial SSE (level l on row l)
    """
    x_t = x_ref[0].astype(jnp.float32)                            # (d, t)
    # 0.5*||x||^2 per column — computed once per tile, shared by all levels.
    half_x2 = 0.5 * jnp.sum(x_t * x_t, axis=0, keepdims=True)     # (1, t)

    num_levels = q_ref.shape[0]
    k_max = cb_ref.shape[1]
    t = x_t.shape[1]

    row = jax.lax.broadcasted_iota(jnp.int32, (k_max, t), 0)
    lane_rows = jax.lax.broadcasted_iota(jnp.int32, (num_levels, 128), 0)
    sse_slab = jnp.zeros((num_levels, 128), jnp.float32)

    for l in range(num_levels):                                   # L <= 3, unrolled
        cb_l = cb_ref[l].astype(jnp.float32)                      # (Kmax, d)
        hc2_l = hc2_ref[l].astype(jnp.float32)                    # (Kmax, 1)

        # argmin_k ||x-c_k||^2 == argmin_k [0.5*(||x||^2+||c_k||^2) - <x,c_k>]
        xc = jax.lax.dot_general(cb_l, x_t, (((1,), (0,)), ((), ())),
                                 preferred_element_type=jnp.float32)   # (Kmax, t)
        dist = (half_x2 + hc2_l) - xc                             # 0.5*||x-c||^2

        # XLU sublane reductions; first-occurrence tie-break matches argmin.
        best = jnp.min(dist, axis=0, keepdims=True)               # (1, t)
        best_idx = jnp.min(jnp.where(dist == best, row, k_max),
                           axis=0, keepdims=True)                 # (1, t) int32
        enc = (row == best_idx).astype(jnp.float32)               # one-hot (Kmax,t)

        # quantized^T = cb^T @ one-hot -> exact codebook columns (MXU)
        q_t = jax.lax.dot_general(cb_l, enc, (((0,), (0,)), ((), ())),
                                  preferred_element_type=jnp.float32)  # (d, t)
        q_ref[l, 0] = q_t.astype(q_ref.dtype)

        # ||x - c_best||^2 == 2 * best (folded distance); no diff materialized.
        sse_l = 2.0 * jnp.sum(jnp.maximum(best, 0.0))
        sse_slab = sse_slab + (lane_rows == l).astype(jnp.float32) * sse_l

    sse_ref[0, 0] = sse_slab


# ------------------------------ wrapper ------------------------------------ #

_VMEM_LIMIT_BYTES = 32 * 1024 * 1024      # conservative: fits v7x 64 MiB physical
_VMEM_TILE_BUDGET = _VMEM_LIMIT_BYTES // 2


def _step_vmem_bytes(tile, num_levels, d, k_max):
    io = 2 * (1 + num_levels) * d * tile * 4          # double-buffered x + L q tiles
    inter = 6 * k_max * tile * 4 + 4 * d * tile * 4   # dist/enc/xc + f32 working copies
    cb = 2 * num_levels * k_max * (d + 2) * 4         # codebooks + norms (dbl-buffered)
    sse = 2 * num_levels * 128 * 4
    return io + inter + cb + sse


def _pick_tile_hw(hw, b, num_levels, d, k_max):
    """Largest lane-aligned tile of H*W that fits the VMEM budget while keeping
    at least 2 (ideally 4) total grid steps for pipelining / v7x megacore."""
    if hw % 128 != 0:
        # TODO(synk): pad H*W to a multiple of 128 to avoid masked partial
        # lane stores; for now fall back to a single full (masked) block.
        return hw
    divisors = [t for t in range(128, hw + 1, 128) if hw % t == 0]
    fitting = [t for t in divisors
               if _step_vmem_bytes(t, num_levels, d, k_max) <= _VMEM_TILE_BUDGET]
    tile = max(fitting) if fitting else 128
    target_steps = 4 if b * (hw // 128) >= 4 else 2
    while b * (hw // tile) < target_steps:
        smaller = [t for t in divisors if t < tile]
        if not smaller:
            break
        tile = max(smaller)
    return tile


@partial(jax.jit, static_argnames=("tile_hw",))
def _vq_quantize_levels(x_bdn, codebooks, *, tile_hw):
    """Quantize x_bdn (B, d, HW) against every codebook [(K_l, d), ...] at once.

    Returns (q (L, B, d, HW) in x dtype, mse (L,) float32).
    """
    b, d, hw = x_bdn.shape
    num_levels = len(codebooks)
    k_max = max(int(cb.shape[0]) for cb in codebooks)

    # Stack & zero-pad codebooks.  Padded rows get a 1e30 half-squared-norm
    # sentinel so they can never win the argmin.
    cb_rows, hc2_rows = [], []
    for cb in codebooks:
        cb = cb.astype(jnp.float32)
        pad = k_max - int(cb.shape[0])
        cb_rows.append(jnp.pad(cb, ((0, pad), (0, 0))))
        hc2 = 0.5 * jnp.sum(cb * cb, axis=1)
        hc2_rows.append(jnp.pad(hc2, (0, pad), constant_values=1e30))
    cb_stack = jnp.stack(cb_rows)                    # (L, Kmax, d)
    hc2_stack = jnp.stack(hc2_rows)[..., None]       # (L, Kmax, 1)

    num_tiles = hw // tile_hw

    q, sse = pl.pallas_call(
        _vq_levels_kernel,
        out_shape=(
            jax.ShapeDtypeStruct((num_levels, b, d, hw), x_bdn.dtype),
            jax.ShapeDtypeStruct((b, num_tiles, num_levels, 128), jnp.float32),
        ),
        grid_spec=pltpu.PrefetchScalarGridSpec(
            num_scalar_prefetch=0,
            grid=(b, num_tiles),
            in_specs=[
                pl.BlockSpec((1, d, tile_hw), lambda i, j: (i, 0, j)),
                pl.BlockSpec((num_levels, k_max, d), lambda i, j: (0, 0, 0)),
                pl.BlockSpec((num_levels, k_max, 1), lambda i, j: (0, 0, 0)),
            ],
            out_specs=[
                pl.BlockSpec((num_levels, 1, d, tile_hw),
                             lambda i, j: (0, i, 0, j)),
                pl.BlockSpec((1, 1, num_levels, 128), lambda i, j: (i, j, 0, 0)),
            ],
        ),
        compiler_params=pltpu.CompilerParams(
            dimension_semantics=("parallel", "parallel"),
            vmem_limit_bytes=_VMEM_LIMIT_BYTES),
    )(x_bdn, cb_stack, hc2_stack)

    sse_per_level = jnp.sum(sse[..., 0], axis=(0, 1))             # (L,)
    mse = sse_per_level / jnp.float32(b * hw * d)
    return q, mse


# --------------------------- Module (JAX glue) ----------------------------- #

class NestedAdaptiveVectorQuantizer:
    def __init__(self, embedding_dim, codebook_size, commitment_cost=0.4,
                 decay=0.8, epsilon=1e-05, *, key):
        self.d = embedding_dim
        self.p = codebook_size
        self._commitment_cost = commitment_cost
        self._decay = decay
        self._epsilon = epsilon
        # nn.Embedding default init: N(0, 1). Deterministic synthetic weights.
        self.codebook_weight = jax.random.normal(
            key, (self.p, self.d), dtype=jnp.float32)
        # TODO(synk): _ema_cluster_size / _ema_w_arr are EMA-training state,
        # unused by forward(); omitted.
        coefs = [0.56, 0.65, 0.69, 0.82, 0.9, 1, 1.2, 1.5]
        coefs.reverse()
        self.coefs = coefs

    def number_to_pair(self, n):
        if n == 1:
            return (0, 1)
        m = (n - 1) // 2
        return (2 * m + 3 + (n % 2 == 0) - 1, 2 * m + 4 + (n % 2 == 0) - 1)

    def build_codebook(self, prev_cb, stage):
        i0, i1 = self.number_to_pair(stage)
        vecs_to_add = self.codebook_weight[i0:i1 + 1]
        if stage == 1:
            return vecs_to_add
        new_cb = prev_cb[:, None, :] + vecs_to_add[None, :, :]
        return new_cb.reshape(-1, self.d)

    def forward(self, inputs, num_vectors, prev_cbs):
        num_levels = int(np.log2(num_vectors))
        if num_vectors == 2:
            cbs = [self.build_codebook(0, 1)]
        else:
            new_cb = self.build_codebook(prev_cbs[-1], num_levels)
            cbs = list(prev_cbs) + [new_cb]

        b, c, h, w = inputs.shape
        assert c == self.d
        hw = h * w
        # Free (contiguous) reshape — no HBM transpose.  Kernel works per batch
        # row on a lane-dense (d, H*W) slab.
        x_bdn = inputs.reshape(b, self.d, hw)

        k_max = max(int(cb.shape[0]) for cb in cbs)
        tile_hw = _pick_tile_hw(hw, b, num_levels, self.d, k_max)

        q_all, mses = _vq_quantize_levels(x_bdn, tuple(cbs), tile_hw=tile_hw)
        q_all = q_all.reshape(num_levels, b, self.d, h, w)   # free reshape, NCHW

        quant_vecs, losses = [], []
        for level in range(num_levels):
            quantized = q_all[level]
            mse = mses[level]
            e_latent_loss = mse      # F.mse_loss(quantized.detach(), inputs)
            q_latent_loss = mse      # F.mse_loss(inputs.detach(), quantized)
            cb_loss = (self.coefs[level] * q_latent_loss
                       + self._commitment_cost * e_latent_loss)
            # Straight-through estimator: forward value of
            # inputs + stop_gradient(quantized - inputs) equals `quantized`
            # exactly, so the redundant add is dropped from the executed path.
            # TODO(synk): wrap the quantization in jax.custom_vjp to get
            # straight-through / loss gradients (pallas_call has no VJP here).
            quant_vecs.append(quantized)
            losses.append(cb_loss)
        return quant_vecs, losses, cbs


# ----------------------------- reference (numpy) --------------------------- #

def _ref_quantize(flat, cb):
    dist = (np.sum(flat ** 2, axis=1, keepdims=True)
            + np.sum(cb ** 2, axis=1)[None, :]
            - 2.0 * flat @ cb.T)
    idx = np.argmin(dist, axis=1)
    q = cb[idx]
    mse = np.mean((q - flat) ** 2)
    return q, mse


# --------------------------------- main ------------------------------------ #

if __name__ == "__main__":
    key = jax.random.PRNGKey(0)
    k_cb, k_x = jax.random.split(key)

    embedding_dim = 8    # channels (d)
    codebook_size = 8    # p -> up to log2(8) = 3 levels
    B, H, W = 2, 16, 16  # H*W = 256 (lane-aligned), N = 512

    vq = NestedAdaptiveVectorQuantizer(embedding_dim, codebook_size, key=k_cb)

    x = jax.random.normal(k_x, (B, embedding_dim, H, W), dtype=jnp.float32)  # NCHW

    # Successive refinement: build codebooks stage by stage as the module does.
    qv1, l1, cbs1 = vq.forward(x, 2, [])
    qv2, l2, cbs2 = vq.forward(x, 4, cbs1)
    quant_vecs, losses, cbs = vq.forward(x, 8, cbs2)

    quant_vecs = [jax.block_until_ready(q) for q in quant_vecs]
    losses = [jax.block_until_ready(l) for l in losses]

    # Pure-numpy reference check.
    x_np = np.asarray(x)
    x_nhwc = np.transpose(x_np, (0, 2, 3, 1))
    flat = x_nhwc.reshape(-1, embedding_dim)
    ok = True
    for level in range(3):
        cb_np = np.asarray(cbs[level])
        q_ref, mse_ref = _ref_quantize(flat, cb_np)
        q_ref_nchw = np.transpose(q_ref.reshape(x_nhwc.shape), (0, 3, 1, 2))
        loss_ref = (vq.coefs[level] + vq._commitment_cost) * mse_ref
        if not np.allclose(np.asarray(quant_vecs[level]), q_ref_nchw,
                           rtol=1e-5, atol=1e-5):
            ok = False
        if not np.allclose(float(losses[level]), loss_ref, rtol=1e-5, atol=1e-6):
            ok = False

    print("KERNEL_OK" if ok else "MISMATCH")
</pallas_src>

<mosaic_0001>
module attributes {stable_mosaic.version = 11 : i64} {
  func.func @_vq_levels_kernel(%arg0: i32, %arg1: i32, %arg2: memref<1x8x128xf32, #tpu.memory_space<vmem>>, %arg3: memref<1x2x8xf32, #tpu.memory_space<vmem>>, %arg4: memref<1x2x1xf32, #tpu.memory_space<vmem>>, %arg5: memref<1x1x8x128xf32, #tpu.memory_space<vmem>>, %arg6: memref<1x1x1x128xf32, #tpu.memory_space<vmem>>) attributes {dimension_semantics = [#tpu.dimension_semantics<parallel>, #tpu.dimension_semantics<parallel>], iteration_bounds = array<i64: 2, 2>, scalar_prefetch = 0 : i64, scratch_operands = 0 : i64, tpu.core_type = #tpu.core_type<tc>, window_params = [{transform_indices = @transform_0, window_bounds = array<i64: 1, 8, 128>}, {pipeline_mode = #tpu.pipeline_mode<synchronous>, transform_indices = @transform_1, window_bounds = array<i64: 1, 2, 8>}, {pipeline_mode = #tpu.pipeline_mode<synchronous>, transform_indices = @transform_2, window_bounds = array<i64: 1, 2, 1>}, {transform_indices = @transform_3, window_bounds = array<i64: 1, 1, 8, 128>}, {transform_indices = @transform_4, window_bounds = array<i64: 1, 1, 1, 128>}]} {
    %c0 = arith.constant 0 : index
    %c0_0 = arith.constant 0 : index
    %c0_1 = arith.constant 0 : index
    %0 = vector.load %arg2[%c0, %c0_0, %c0_1] : memref<1x8x128xf32, #tpu.memory_space<vmem>>, vector<1x8x128xf32>
    %1 = vector.shape_cast %0 : vector<1x8x128xf32> to vector<8x128xf32>
    %2 = arith.mulf %1, %1 : vector<8x128xf32>
    %cst = arith.constant dense<0.000000e+00> : vector<128xf32>
    %3 = vector.multi_reduction <add>, %2, %cst [0] : vector<8x128xf32> to vector<128xf32>
    %4 = vector.shape_cast %3 : vector<128xf32> to vector<1x128xf32>
    %cst_2 = arith.constant 5.000000e-01 : f32
    %5 = vector.broadcast %cst_2 : f32 to vector<1x128xf32>
    %6 = arith.mulf %5, %4 : vector<1x128xf32>
    %7 = tpu.iota {dimensions = array<i32: 0>} : vector<2x128xi32>
    %8 = tpu.iota {dimensions = array<i32: 0>} : vector<1x128xi32>
    %cst_3 = arith.constant 0.000000e+00 : f32
    %9 = vector.broadcast %cst_3 : f32 to vector<1x128xf32>
    %c0_4 = arith.constant 0 : index
    %c0_5 = arith.constant 0 : index
    %c0_6 = arith.constant 0 : index
    %10 = vector.load %arg3[%c0_4, %c0_5, %c0_6] : memref<1x2x8xf32, #tpu.memory_space<vmem>>, vector<1x2x8xf32>
    %11 = vector.shape_cast %10 : vector<1x2x8xf32> to vector<2x8xf32>
    %c0_7 = arith.constant 0 : index
    %c0_8 = arith.constant 0 : index
    %c0_9 = arith.constant 0 : index
    %12 = vector.load %arg4[%c0_7, %c0_8, %c0_9] : memref<1x2x1xf32, #tpu.memory_space<vmem>>, vector<1x2x1xf32>
    %13 = vector.shape_cast %12 : vector<1x2x1xf32> to vector<2x1xf32>
    %cst_10 = arith.constant dense<0.000000e+00> : vector<2x128xf32>
    %14 = tpu.matmul %11, %1, %cst_10 {dimension_numbers = #tpu.dot_dimension_numbers<[1], [0], [0], [1], [0, 0, 1, 1], [], []>} : vector<2x8xf32>, vector<8x128xf32>, vector<2x128xf32> -> vector<2x128xf32>
    %15 = vector.broadcast %6 : vector<1x128xf32> to vector<2x128xf32>
    %16 = vector.broadcast %13 : vector<2x1xf32> to vector<2x128xf32>
    %17 = arith.addf %15, %16 : vector<2x128xf32>
    %18 = arith.subf %17, %14 : vector<2x128xf32>
    %cst_11 = arith.constant dense<0x7F800000> : vector<128xf32>
    %19 = vector.multi_reduction <minimumf>, %18, %cst_11 [0] : vector<2x128xf32> to vector<128xf32>
    %20 = vector.shape_cast %19 : vector<128xf32> to vector<1x128xf32>
    %21 = vector.broadcast %20 : vector<1x128xf32> to vector<2x128xf32>
    %22 = arith.cmpf oeq, %18, %21 : vector<2x128xf32>
    %c2_i32 = arith.constant 2 : i32
    %23 = vector.broadcast %c2_i32 : i32 to vector<2x128xi32>
    %24 = arith.select %22, %7, %23 : vector<2x128xi1>, vector<2x128xi32>
    %cst_12 = arith.constant dense<2147483647> : vector<128xi32>
    %25 = vector.multi_reduction <minsi>, %24, %cst_12 [0] : vector<2x128xi32> to vector<128xi32>
    %26 = vector.shape_cast %25 : vector<128xi32> to vector<1x128xi32>
    %27 = vector.broadcast %26 : vector<1x128xi32> to vector<2x128xi32>
    %28 = arith.cmpi eq, %7, %27 : vector<2x128xi32>
    %29 = arith.extui %28 : vector<2x128xi1> to vector<2x128xi32>
    %30 = arith.sitofp %29 : vector<2x128xi32> to vector<2x128xf32>
    %cst_13 = arith.constant dense<0.000000e+00> : vector<8x128xf32>
    %31 = tpu.matmul %11, %30, %cst_13 {dimension_numbers = #tpu.dot_dimension_numbers<[0], [0], [1], [1], [0, 1, 1, 1], [], []>} : vector<2x8xf32>, vector<2x128xf32>, vector<8x128xf32> -> vector<8x128xf32>
    %c0_14 = arith.constant 0 : index
    %c0_15 = arith.constant 0 : index
    %c0_16 = arith.constant 0 : index
    %c0_17 = arith.constant 0 : index
    %32 = vector.load %arg5[%c0_14, %c0_15, %c0_16, %c0_17] : memref<1x1x8x128xf32, #tpu.memory_space<vmem>>, vector<1x1x8x128xf32>
    %33 = vector.shape_cast %32 : vector<1x1x8x128xf32> to vector<8x128xf32>
    %34 = vector.shape_cast %31 : vector<8x128xf32> to vector<1x1x8x128xf32>
    tpu.vector_store %arg5[%c0_14, %c0_15, %c0_16, %c0_17], %34 {strides = array<i32>} : memref<1x1x8x128xf32, #tpu.memory_space<vmem>>, vector<1x1x8x128xf32>,
    %cst_18 = arith.constant 0.000000e+00 : f32
    %35 = vector.broadcast %cst_18 : f32 to vector<1x128xf32>
    %36 = arith.maximumf %20, %35 : vector<1x128xf32>
    %37 = vector.shape_cast %36 : vector<1x128xf32> to vector<1x1x128xf32>
    %cst_19 = arith.constant dense<0.000000e+00> : vector<1xf32>
    %38 = vector.multi_reduction <add>, %37, %cst_19 [1, 2] : vector<1x1x128xf32> to vector<1xf32>
    %39 = vector.shape_cast %38 : vector<1xf32> to vector<1x1x1xf32>
    %40 = vector.extract %39[0, 0, 0] : f32 from vector<1x1x1xf32>
    %cst_20 = arith.constant 2.000000e+00 : f32
    %41 = arith.mulf %cst_20, %40 : f32
    %c0_i32 = arith.constant 0 : i32
    %42 = vector.broadcast %c0_i32 : i32 to vector<1x128xi32>
    %43 = arith.cmpi eq, %8, %42 : vector<1x128xi32>
    %44 = arith.extui %43 : vector<1x128xi1> to vector<1x128xi32>
    %45 = arith.sitofp %44 : vector<1x128xi32> to vector<1x128xf32>
    %46 = vector.broadcast %41 : f32 to vector<1x128xf32>
    %47 = arith.mulf %45, %46 : vector<1x128xf32>
    %48 = arith.addf %9, %47 : vector<1x128xf32>
    %c0_21 = arith.constant 0 : index
    %c0_22 = arith.constant 0 : index
    %c0_23 = arith.constant 0 : index
    %c0_24 = arith.constant 0 : index
    %49 = vector.load %arg6[%c0_21, %c0_22, %c0_23, %c0_24] : memref<1x1x1x128xf32, #tpu.memory_space<vmem>>, vector<1x1x1x128xf32>
    %50 = vector.shape_cast %49 : vector<1x1x1x128xf32> to vector<1x128xf32>
    %51 = vector.shape_cast %48 : vector<1x128xf32> to vector<1x1x1x128xf32>
    tpu.vector_store %arg6[%c0_21, %c0_22, %c0_23, %c0_24], %51 {strides = array<i32>} : memref<1x1x1x128xf32, #tpu.memory_space<vmem>>, vector<1x1x1x128xf32>,
    return
  }
  func.func @transform_0(%arg0: i32, %arg1: i32) -> (i32, i32, i32) {
    %c0_i32 = arith.constant 0 : i32
    %c0_i32_0 = arith.constant 0 : i32
    return %arg0, %c0_i32, %arg1 : i32, i32, i32
  }
  func.func @transform_1(%arg0: i32, %arg1: i32) -> (i32, i32, i32) {
    %c0_i32 = arith.constant 0 : i32
    %c0_i32_0 = arith.constant 0 : i32
    %c0_i32_1 = arith.constant 0 : i32
    %c0_i32_2 = arith.constant 0 : i32
    return %c0_i32, %c0_i32_0, %c0_i32_1 : i32, i32, i32
  }
  func.func @transform_2(%arg0: i32, %arg1: i32) -> (i32, i32, i32) {
    %c0_i32 = arith.constant 0 : i32
    %c0_i32_0 = arith.constant 0 : i32
    %c0_i32_1 = arith.constant 0 : i32
    %c0_i32_2 = arith.constant 0 : i32
    return %c0_i32, %c0_i32_0, %c0_i32_1 : i32, i32, i32
  }
  func.func @transform_3(%arg0: i32, %arg1: i32) -> (i32, i32, i32, i32) {
    %c0_i32 = arith.constant 0 : i32
    %c0_i32_0 = arith.constant 0 : i32
    %c0_i32_1 = arith.constant 0 : i32
    return %c0_i32, %arg0, %c0_i32_0, %arg1 : i32, i32, i32, i32
  }
  func.func @transform_4(%arg0: i32, %arg1: i32) -> (i32, i32, i32, i32) {
    %c0_i32 = arith.constant 0 : i32
    %c0_i32_0 = arith.constant 0 : i32
    %c0_i32_1 = arith.constant 0 : i32
    return %arg0, %arg1, %c0_i32, %c0_i32_0 : i32, i32, i32, i32
  }
}

</mosaic_0001>

<bundles_post_ra>
// kernel: _vq_quantize_levels.1
= control target key start
LH: loop header
LB: loop body
LE: loop exit
PB: predicated region body
PF: predicated region fallthrough
CT: control target
= control target key end

     0   :  { %s1138_s0 = inlined_call_operand.hbm [shape: f32[2,8,256], index: 0, kind: input, shape index: {}]   ;;  %s1139_s1 = inlined_call_operand.vmem [shape: f32[1,2,8], index: 1, kind: input, shape index: {}]   ;;  %s1140_s2 = inlined_call_operand.vmem [shape: f32[1,2,1], index: 2, kind: input, shape index: {}]   ;;  %s1141_s3 = inlined_call_operand.hbm [shape: f32[1,2,8,256], index: 3, kind: output, shape index: {0}]   ;;  %s1142_s4 = inlined_call_operand.vmem [shape: f32[2,2,1,128], index: 4, kind: output, shape index: {1}]  }
   0x1   :  { %1145 = sst [smem:[#allocation9_spill]] %s1138_s0 }
   0x2   :  { %10 = vsyncpa [#allocation3], 0 }
   0x3   :  { %12 = vsyncpa [#allocation3 + $0x1], 0 }
   0x4   :  { %13 = vsyncpa [#allocation4], 0 }
   0x5   :  { %15 = vsyncpa [#allocation4 + $0x1], 0  ;;  %s918_s15 = smov 0   ;;  %s920_s16 = smov 0  }
   0x6   :  { %s922_s17 = smov 0   ;;  %s924_s18 = smov 0  }
   0x7   :  { %s926_s19 = smov 0   ;;  %s928_s20 = smov 0  }
   0x8   :  { %s930_s21 = smov 0   ;;  %s932_s22 = smov 0  }
   0x9 LB: > { %s639_s23 = sadd.s32 4294967295, %s886_s22   ;;  %s640_s24 = sadd.s32 4294967294, %s886_s22   ;;  %s886_s22 = sphi %s932_s22, %s21_s22   ;;  %s882_s21 = sphi %s930_s21, %s1164_s21   ;;  %s878_s20 = sphi %s928_s20, %s1163_s20   ;;  %s874_s19 = sphi %s926_s19, %s1162_s19   ;;  %s870_s18 = sphi %s924_s18, %s1161_s18   ;;  %s866_s17 = sphi %s922_s17, %s1160_s17   ;;  %s862_s16 = sphi %s920_s16, %s1159_s16   ;;  %s858_s15 = sphi %s918_s15, %s1158_s15  }
   0xa   : > { %s30_s25 = sadd.s32 1, %s878_s20  ;;  %s33_s26 = sadd.s32 1, %s882_s21 }
   0xb   : > { %p31_p0 = scmp.ge.s32.totalorder %s30_s25, 2  ;;  %s42_s27 = sadd.s32 1, %s866_s17 }
   0xc   : > { %p49_p1 = scmp.ne.s32.totalorder %s866_s17, %s862_s16  ;;  %p50_p2 = scmp.eq.s32.totalorder %s886_s22, 0 }
   0xd   : > { %s1166_s25 = smov (%p31_p0, %s30_s25), 0  ;;  %s1168_s26 = smov (!%p31_p0, %s33_s26), %s882_s21 }
   0xe   : > { %s38_s28 = ssub.s32 %s878_s20, %s1166_s25  ;;  %p971_p3 = por %p50_p2, %p49_p1 }
   0xf   : > { %p35_p4 = scmp.ge.s32.totalorder %s1168_s26, 2  ;;  %p55_p5 = scmp.ne.s32.totalorder %s862_s16, %s858_s15 }
  0x10   : > { %p56_p6 = scmp.eq.s32.totalorder %s639_s23, 0  ;;  %p123_p7 = scmp.eq.s32.totalorder %s639_s23, 3 }
  0x11   : > { %s1170_s26 = smov (%p35_p4, %s1168_s26), 0  ;;  %p129_p10 = scmp.eq.s32.totalorder %s640_s24, 3 }
  0x12   : > { %1147 = sst [smem:[#allocation8_spill]] %s1170_s26  ;;  %p979_p8 = por %p56_p6, %p55_p5 }
  0x13   : > { %p983_p9 = por %p123_p7, %p49_p1  ;;  %s37_s6 = ssub.s32 %s882_s21, %s1170_s26 }
  0x14   : > { %s39_s7 = sor.u32 %s38_s28, %s37_s6  ;;  %p989_p12 = por %p129_p10, %p55_p5 }
  0x15   : > { %s1149_s5 = scalar_select %p983_p9, 1, 0 }
  0x16   : > { %p40_p11 = scmp.eq.s32.totalorder %s39_s7, 0  ;;  %p688_p13 = scmp.lt.s32.totalorder %s886_s22, 4 }
  0x17   : > { %s1150_s8 = scalar_select %p989_p12, 1, 0 }
  0x18   : > { %s183_s9 = sand.u32 1, %s866_s17   ;;  %s644_s12 = sshll.u32 %s882_s21, 1 }
  0x19   : > { %s996_s10 = scalar_select %p40_p11, %s866_s17, %s42_s27  }
  0x1a   : > { %s643_s11 = sshll.u32 %s183_s9, 3  ;;  %s192_s13 = sadd.s32 %s878_s20, %s644_s12 }
  0x1b   : > { %s187_s14 = scalar_lea.vmem [#allocation2], %s643_s11  ;;  %s645_s26 = sshll.u32 %s192_s13, 7 }
  0x1c   : > { %s196_s23 = sshll.u32 %s187_s14, 4  ;;  %s1151_s0 = sld [smem:[#allocation9_spill]]  ;;  %s1000_s23 = int_to_ptr.vmem [resolvable:$true] %s196_s23 }
  0x1d   : > { %p1009_p0 = pnand %p688_p13, %p971_p3  ;;  %s184_s7 = scalar_lea.sflag [#allocation3], %s183_s9 }
  0x1f   : > { %p760_p5 = pneg %p1009_p0 }
  0x22   : > { %s1005_s6 = scalar_lea.hbm %s1151_s0, %s645_s26  ;;  %s763_s12 = scalar_lea.hbm %s1151_s0, 512 }
  0x23   : > { %s758_s11 = scalar_lea.hbm %s1005_s6, 128  ;;  %p764_p3 = scmp.lt.u32.totalorder %s1005_s6, %s1151_s0 }
  0x24   : > { %p759_p4 = scmp.ne.s32.totalorder %s1005_s6, %s758_s11  ;;  %p765_p10 = scmp.lt.u32.totalorder %s763_s12, %s758_s11 }
  0x25   : > { %p767_p13 = scmp.lt.u32.totalorder %s758_s11, %s1005_s6 }
  0x26   : > { %p761_p6 = pnand %p760_p5, %p759_p4  ;;  %p766_p11 = por %p765_p10, %p764_p3 }
  0x28   : > { %p762_p7 = pneg %p761_p6  ;;  %p768_p1 = por %p767_p13, %p766_p11 }
  0x2a   : > { %p769_p2 = pnand %p768_p1, %p762_p7 }
  0x2c   : > { %772 = shalt.err (!%p769_p2)
}
  0x2d   : > { %s773_s9 = scalar_lea.vmem %s1000_s23, 128  ;;  %s888_s24 = smov [#allocation2]  }
  0x2e   : > { %p774_p4 = scmp.ne.s32.totalorder %s1000_s23, %s773_s9  ;;  %s778_s28 = sshll.u32 %s888_s24, 4  ;;  %s779_s28 = int_to_ptr.vmem [resolvable:$false] %s778_s28 }
  0x2f   : > { %s780_s26 = scalar_lea.vmem %s779_s28, 256  ;;  %p781_p9 = scmp.lt.s32.totalorder %s1000_s23, %s779_s28 }
  0x30   : > { %p776_p6 = pnand %p774_p4, %p760_p5  ;;  %p782_p3 = scmp.lt.s32.totalorder %s780_s26, %s773_s9 }
  0x32   : > { %p777_p12 = pneg %p776_p6  ;;  %p783_p10 = por %p782_p3, %p781_p9 }
  0x34   : > { %p784_p11 = pnand %p783_p10, %p777_p12 }
  0x36   : > { %787 = shalt.err (!%p784_p11)
}
  0x37   : > { %683 = dma.hbm_to_vmem [thread:$0]  (!%p1009_p0), %s1005_s6, 128, %s1000_s23, %s184_s7  }
  0x38   : > { %p1153_p1 = scmp.lt.s32.totalorder %s886_s22, 5  ;;  %p1154_p2 = scmp.ge.s32.totalorder %s886_s22, 1 }
  0x3a   : > { %p202_p5 = pnand %p1154_p2, %p1153_p1 }
  0x3b   : > { %s1045_s11 = sand.u32 (!%p202_p5), 1, %s862_s16  }
  0x3c   : > { %205 = sbr.rel (%p202_p5) target bundleno = 543 (0x21f), region = 32  ;;  %s647_s29 = sshll.u32 (!%p202_p5), %s1045_s11, 3 }
  0x3d   : > { %s208_s12 = scalar_lea.sflag (!%p202_p5), [#allocation3], %s1045_s11  ;;  %s211_s27 = scalar_lea.vmem (!%p202_p5), [#allocation2], %s647_s29 }
  0x43   : > { %849 = dma.done.wait (%p979_p8), %s208_s12, 128  }
  0x44   : > { %851 = vsyncadd (%p979_p8), %s208_s12, 4294967168  ;;  %v889_v0 = vmov 0.0   ;;  %vm890_vm0 = vmmov 0   ;;  %v891_v1 = vmov 0   ;;  %vm263_vm1 = vcmask 64512   ;;  %v250_v2 = vld [vmem:[%s211_s27] sm:$0xff] }
  0x45   : > { %664 = vmatprep.subr.mxu0 %v889_v0  ;;  %666 = vmatprep.mubr.msk.f32.mxu0 %vm890_vm0, %v889_v0  ;;  %v261_v3 = vld [vmem:[%s1139_s1] sm:$0x3]  ;;  %v251_v5 = vmul.f32 %v250_v2, %v250_v2  ;;  %vm344_vm2 = vcmask 1041408   ;;  %v259_v22 = vlaneseq  ;;  %vm478_vm3 = vcmask 1040384   ;;  %p243_p8 = scmp.lt.s32.totalorder %s874_s19, 1  ;;  %p245_p9 = scmp.lt.s32.totalorder %s870_s18, 1 }
  0x46   : > { %757 = vset.pattern.permute.xlu0 %v891_v1  ;;  %669 = vmatprep.subr.mxu1 %v889_v0  ;;  %v262_v4 = vld [vmem:[%s1140_s2] sm:$0x3]  ;;  %vm399_vm9 = vcmask 15360   ;;  %s656_s6 = sshll.u32 %s874_s19, 1  ;;  %s233_s7 = scalar_lea.vmem [#allocation5], %s647_s29 }
  0x47   : > { %671 = vmatprep.mubr.msk.f32.mxu1 %vm890_vm0, %v889_v0  ;;  %665 = vmatpush3.msra.mxu0 %v250_v2  ;;  %v252_v6 = vrot.slane %v251_v5, 4  ;;  %v260_v25 = vshrl.u32 %v259_v22, 7  ;;  %s244_s13 = scalar_select %p243_p8, %s874_s19, 1 }
  0x48   : > { %339 = vperm.xlu0 %757, %v262_v4   ;;  %667 = vmatmul.mubr.msk.f32.vlgmr.msra.gmra.mrb[0].mxu0 %vm263_vm1, %v261_v3  ;;  %s246_s14 = scalar_select %p245_p9, %s870_s18, 1 }
  0x49   : > { %v253_v7 = vadd.f32 %v252_v6, %v251_v5  ;;  %s649_s9 = sshll.u32 %s244_s13, 1  ;;  %vm490_vm10 = vcmp.eq.s32.totalorder %v260_v25, 0  ;;  %s516_s30 = sadd.s32 %s870_s18, %s656_s6 }
  0x4a   : > { %s248_s24 = sadd.s32 %s649_s9, %s246_s14  ;;  %v654_v46 = vsel %vm490_vm10, 1.0, %v889_v0  ;;  %s520_s13 = sshll.u32 %s233_s7, 4  ;;  %s1081_s13 = int_to_ptr.vmem [resolvable:$true] %s520_s13 }
  0x4b   : > { %v254_v8 = vrot.slane %v253_v7, 2  ;;  %s249_s23 = scalar_lea.vmem %s1142_s4, %s248_s24  ;;  %s657_s0 = sshll.u32 %s516_s30, 7 }
  0x4c   : > { %s498_s24 = scalar_lea.sflag [#allocation4], %s1045_s11  ;;  %s788_s19 = scalar_lea.vmem %s1081_s13, 128 }
  0x4d   : > { %v255_v9 = vadd.f32 %v254_v8, %v253_v7  ;;  %p789_p12 = scmp.ne.s32.totalorder %s1081_s13, %s788_s19  ;;  %p1155_p0 = scmp.ne.s32.totalorder %s1149_s5, 0 }
  0x4e   : > { %s892_s18 = smov [#allocation5]  }
  0x4f   : > { %v256_v10 = vrot.slane %v255_v9, 1  ;;  %p790_p7 = pnand %p789_p12, %p1155_p0  ;;  %s792_s29 = sshll.u32 %s892_s18, 4  ;;  %s793_s29 = int_to_ptr.vmem [resolvable:$false] %s792_s29 }
  0x50   : > { %p795_p4 = scmp.lt.s32.totalorder %s1081_s13, %s793_s29 }
  0x51   : > { %v257_v11 = vadd.f32 %v256_v10, %v255_v9  ;;  %p791_p13 = pneg %p790_p7 }
  0x53   : > { %v258_v12 = vmul.f32 0.5, %v257_v11 }
  0x66   : > { %367 = vxpose.xlu0.b32.start.end [1/1] (short) (narrow) %v261_v3, 8 }
  0xc7   : > { %v340_v13 = vpop.permute.xlu0 %339 }
  0xc8   : > { %v342_v14 = vadd.f32 %v340_v13, %v258_v12 }
  0xe6   : > { %v383_v37 = vpop.trf.xlu0 }
 0x11b   : > { %v333_v15 = vpop.f32.mrb[0].mxu0 }
 0x11c   : > { %v343_v16 = vsub.f32 %v342_v14, %v333_v15  ;;  %v668_v17 = vpop.f32.mrb[1].mxu0 }
 0x11e   : > { %v345_v18 = vsel %vm344_vm2, %v343_v16, inf }
 0x11f   : > { %v346_v19 = vrot.slane %v345_v18, 4 }
 0x121   : > { %v347_v20 = vmin.f32 %v345_v18, %v346_v19 }
 0x123   : > { %v348_v21 = vrot.slane %v347_v20, 2 }
 0x125   : > { %v349_v23 = vmin.f32 %v347_v20, %v348_v21 }
 0x127   : > { %v350_v24 = vrot.slane %v349_v23, 1 }
 0x129   : > { %v351_v26 = vmin.f32 %v349_v23, %v350_v24 }
 0x12b   : > { %vm352_vm4 = vcmp.eq.f32.partialorder %v343_v16, %v351_v26  ;;  %v477_v27 = vmax.f32 %v351_v26, 0.0 }
 0x12c   : > { %v353_v28 = vsel %vm352_vm4, %v260_v25, 2 }
 0x12d   : > { %v354_v29 = vsel %vm344_vm2, %v353_v28, 2147483647  ;;  %v479_v30 = vsel %vm478_vm3, %v477_v27, 0.0 }
 0x12e   : > { %v355_v31 = vrot.slane %v354_v29, 4  ;;  %480 = vadd.xlane.f32.xlu1 %v479_v30 }
 0x130   : > { %vm356_vm5 = vcmp.lt.s32.totalorder %v354_v29, %v355_v31 }
 0x131   : > { %v357_v32 = vsel %vm356_vm5, %v354_v29, %v355_v31 }
 0x132   : > { %v358_v33 = vrot.slane %v357_v32, 2 }
 0x134   : > { %vm359_vm6 = vcmp.lt.s32.totalorder %v357_v32, %v358_v33 }
 0x135   : > { %v360_v34 = vsel %vm359_vm6, %v357_v32, %v358_v33 }
 0x136   : > { %v361_v35 = vrot.slane %v360_v34, 1 }
 0x138   : > { %vm362_vm7 = vcmp.lt.s32.totalorder %v360_v34, %v361_v35 }
 0x139   : > { %v363_v36 = vsel %vm362_vm7, %v360_v34, %v361_v35 }
 0x13a   : > { %vm364_vm8 = vcmp.eq.s32.totalorder %v260_v25, %v363_v36 }
 0x13b   : > { %v651_v38 = vsel %vm364_vm8, 1.0, %v889_v0 }
 0x13c   : > { %670 = vmatpush3.msk.msra.mxu1 %vm344_vm2, %v651_v38 }
 0x13d   : > { %672 = vmatmul.mubr.msk.f32.vlgmr.msra.gmra.mrb[0].mxu1 %vm399_vm9, %v383_v37 }
 0x1bb   : > { %v481_v39 = vpop.xlane.xlu1 %480 }
 0x1bc   : > { %v482_v40 = vrot.slane %v481_v39, 4 }
 0x1be   : > { %v483_v41 = vadd.f32 %v482_v40, %v481_v39 }
 0x1c0   : > { %v484_v42 = vrot.slane %v483_v41, 2 }
 0x1c2   : > { %v485_v43 = vadd.f32 %v484_v42, %v483_v41 }
 0x1c4   : > { %v486_v44 = vrot.slane %v485_v43, 1 }
 0x1c6   : > { %v487_v45 = vadd.f32 %v486_v44, %v485_v43 }
 0x1c8   : > { %674 = vpush %v487_v45 }
 0x1f9   : > { %s675_s28 = spop %674 }
 0x1fa   : > { %s489_s26 = smul.f32 2.0, %s675_s28  ;;  %s1086_s28 = scalar_lea.hbm %s1141_s3, %s657_s0 }
 0x1fc   : > { %v493_v47 = vstv %s489_s26  ;;  %s794_s26 = scalar_lea.vmem %s793_s29, 256 }
 0x1fd   : > { %v494_v48 = vmul.f32 %v654_v46, %v493_v47  ;;  %p796_p6 = scmp.lt.s32.totalorder %s794_s26, %s788_s19 }
 0x1ff   : > { %496 = vst [vmem:[%s249_s23] sm:$0x1] %v494_v48  ;;  %p797_p3 = por %p796_p6, %p795_p4 }
 0x201   : > { %p798_p10 = pnand %p797_p3, %p791_p13 }
 0x210   : > { %v472_v49 = vpop.f32.mrb[0].mxu1 }
 0x211   : > { %476 = vst [vmem:[%s233_s7] sm:$0xff] %v472_v49  ;;  %v673_v50 = vpop.f32.mrb[1].mxu1 }
 0x212   : > { %801 = shalt.err (!%p798_p10)
}
 0x213   : > { %s802_s0 = scalar_lea.hbm %s1086_s28, 128  ;;  %s806_s27 = scalar_lea.hbm %s1141_s3, 512 }
 0x214   : > { %p803_p11 = scmp.ne.s32.totalorder %s1086_s28, %s802_s0  ;;  %p807_p5 = scmp.lt.u32.totalorder %s1086_s28, %s1141_s3 }
 0x215   : > { %p808_p8 = scmp.lt.u32.totalorder %s806_s27, %s802_s0  ;;  %p810_p12 = scmp.lt.u32.totalorder %s802_s0, %s1086_s28 }
 0x216   : > { %p804_p1 = pnand %p803_p11, %p1155_p0 }
 0x217   : > { %p809_p9 = por %p808_p8, %p807_p5 }
 0x218   : > { %p805_p2 = pneg %p804_p1 }
 0x219   : > { %p811_p7 = por %p810_p12, %p809_p9 }
 0x21b   : > { %p812_p13 = pnand %p811_p7, %p805_p2 }
 0x21d   : > { %815 = shalt.err (!%p812_p13)
}
 0x21e   : > { %678 = dma.vmem_to_hbm [thread:$0]  (%p1155_p0), %s1081_s13, 128, %s1086_s28, %s498_s24  }
 0x21f PF: > { %p689_p4 = scmp.ge.s32.totalorder %s886_s22, 2  ;;  %s535_s30 = sand.u32 1, %s858_s15  }
 0x220   : > { %p1156_p6 = scmp.ne.s32.totalorder %s1150_s8, 0  ;;  %s536_s7 = scalar_lea.sflag [#allocation4], %s535_s30 }
 0x222   : > { %p685_p3 = pnand %p689_p4, %p1156_p6 }
 0x224   : > { %853 = dma.done.wait (!%p685_p3), %s536_s7, 128  }
 0x225   : > { %855 = vsyncadd (!%p685_p3), %s536_s7, 4294967168  ;;  %s21_s22 = sadd.s32 1, %s886_s22   ;;  %s1157_s5 = sld [smem:[#allocation8_spill]] }
 0x226   : > { %p18_p10 = scmp.ge.s32.totalorder %s21_s22, 6   ;;  %s1158_s15 = smov %s862_s16 }
 0x227   : > { %s1159_s16 = smov %s866_s17  ;;  %s1160_s17 = smov %s996_s10 }
 0x228   : > { %s1161_s18 = smov %s878_s20  ;;  %s1162_s19 = smov %s882_s21 }
 0x229   : > { %s1163_s20 = smov %s1166_s25  ;;  %20 = sbr.rel (!%p18_p10) target bundleno = 9 (0x9), region = 89 }
 0x22b   : > { %s1164_s21 = smov %s1157_s5 }
 0x230   :  { %551 = vsyncpa [#allocation3], 1 }
 0x231   :  { %553 = vsyncpa [#allocation3 + $0x1], 1 }
 0x232   :  { %554 = vsyncpa [#allocation4], 1 }
 0x233   :  { %556 = vsyncpa [#allocation4 + $0x1], 1 }

</bundles_post_ra>
